<compile_context>
chip_gen: v5e
topology: v5e:2x2
jax: 0.10.0
libtpu: 0.0.40
codegen_flags: <defaults>
</compile_context>

<pallas_src>
import jax
import jax.numpy as jnp
from jax import lax
from jax.experimental import pallas as pl
from jax.experimental.pallas import tpu as pltpu


def _mhap_kernel(x_ref, w_ref, b_ref, vbd_ref, o_ref, m_sc, l_sc, acc_sc):
    """One (batch, head-group, time-tile) grid step of MHAP pooling.

    x_ref:   (1, Tt, C)       bf16 time-major features
    w_ref:   (1, C, Hg*dr)    bf16 fused projection weights for this head group
    b_ref:   (1, 1, Hg*dr)    f32  fused biases
    vbd_ref: (1, Hg*dr, Hg)   f32  block-diagonal attention vectors
    o_ref:   (1, 1, C, Hg)    f32  pooled output slab (written on last T tile)
    m_sc:    (1, Hg)  f32     running max of logits over time
    l_sc:    (1, Hg)  f32     running softmax denominator
    acc_sc:  (C, Hg)  f32     running (unnormalized) pooled accumulator
    """
    t = pl.program_id(2)
    nt = pl.num_programs(2)

    @pl.when(t == 0)
    def _init():
        m_sc[...] = jnp.full_like(m_sc, -jnp.inf)
        l_sc[...] = jnp.zeros_like(l_sc)
        acc_sc[...] = jnp.zeros_like(acc_sc)

    x = x_ref[0]                                           # (Tt, C) bf16

    # hid[t, hg*dr+d] = tanh(sum_c x[t,c] * W[c, hg*dr+d] + b)  (f32 acc+tanh)
    hid = jnp.tanh(
        jnp.dot(x, w_ref[0], preferred_element_type=jnp.float32) + b_ref[0])

    # logits[t, hg] = sum_d hid[t, hg*dr+d] * v[hg, d] (block-diag matmul, f32;
    # tiny fraction of total FLOPs so keep it full precision).
    logits = jnp.dot(hid, vbd_ref[0],
                     preferred_element_type=jnp.float32)   # (Tt, Hg)

    # ---- online (flash-style) softmax over the time axis -------------------
    m_prev = m_sc[...]
    m_new = jnp.maximum(m_prev, jnp.max(logits, axis=0, keepdims=True))  # (1, Hg)
    alpha = jnp.exp(m_prev - m_new)                                      # (1, Hg)
    p = jnp.exp(logits - m_new)                                          # (Tt, Hg)

    l_sc[...] = alpha * l_sc[...] + jnp.sum(p, axis=0, keepdims=True)

    # pooled contribution: acc[c, hg] += sum_t x[t, c] * p[t, hg]
    acc_sc[...] = alpha * acc_sc[...] + lax.dot_general(
        x, p.astype(x.dtype), (((0,), (0,)), ((), ())),
        preferred_element_type=jnp.float32)

    m_sc[...] = m_new

    @pl.when(t == nt - 1)
    def _finalize():
        # Exact softmax normalization (denominator is only Hg values — the
        # approx EUP reciprocal bought nothing here, per review).
        o_ref[0, 0] = (acc_sc[...] / l_sc[...]).astype(o_ref.dtype)


def prepare_mhap_params(W, b, v, num_groups=2):
    """Repack per-head SAP parameters into kernel-friendly fused layouts.

    W: (H, C, dr), b: (H, 1, dr), v: (H, 1, dr)
    Returns:
      W3:   (G, C, Hg*dr)   bf16,  W3[g, c, hg*dr+d] = W[g*Hg+hg, c, d]
      b3:   (G, 1, Hg*dr)   f32
      Vbd3: (G, Hg*dr, Hg)  f32 block-diagonal attention vectors
    Done once at model-load time (hoisted out of the per-call path).
    """
    H, C, dr = W.shape
    G = num_groups if H % num_groups == 0 else 1
    Hg = H // G
    Hdr_g = Hg * dr

    W3 = jnp.transpose(W.reshape(G, Hg, C, dr), (0, 2, 1, 3))
    W3 = W3.reshape(G, C, Hdr_g).astype(jnp.bfloat16)
    b3 = b.astype(jnp.float32).reshape(G, 1, Hdr_g)
    eye = jnp.eye(Hg, dtype=jnp.float32)
    Vbd3 = (v.astype(jnp.float32).reshape(G, Hg, dr, 1)
            * eye.reshape(1, Hg, 1, Hg)).reshape(G, Hdr_g, Hg)
    return W3, b3, Vbd3


def _choose_time_tile(T, max_tile=256):
    """Largest time tile <= max_tile that divides T and respects sublane tiling."""
    if T <= max_tile:
        return T
    for tt in range(max_tile, 7, -1):
        if T % tt == 0 and tt % 8 == 0:
            return tt
    return T   # fallback: single tile over all of T (awkward T only)


@jax.jit
def mhap_forward(x, W3, b3, Vbd3):
    """x: (B, C, T) -> (B, H*C), with (W3, b3, Vbd3) from prepare_mhap_params."""
    B, C, T = x.shape
    G, _, Hdr_g = W3.shape
    Hg = Vbd3.shape[-1]
    H = G * Hg

    Tt = _choose_time_tile(T)
    NT = T // Tt

    # Layout plumbing: time-major so C sits on the lane axis; bf16 MXU operand
    # (also halves the x HBM traffic into the kernel).
    # TODO(synk): for memory-bound (short-T) workloads consume (B, C, T)
    # natively instead of paying this HBM relayout.
    xt = jnp.transpose(x, (0, 2, 1)).astype(jnp.bfloat16)        # (B, T, C)

    flops = B * G * (2 * T * C * Hdr_g + 2 * T * Hdr_g * Hg + 2 * T * Hg * C)
    transcendentals = B * G * (T * Hdr_g + T * Hg)               # tanh + exp
    bytes_accessed = (G * B * T * C * 2 + B * G * C * Hdr_g * 2
                      + G * Hdr_g * 4 + G * Hdr_g * Hg * 4 + B * H * C * 4)

    # Explicit scoped-VMEM budget: double-buffered blocks + f32 temporaries,
    # with lane padding of the narrow (Hg-wide) tensors, plus 50% margin.
    lane = 128
    vmem_needed = (
        2 * Tt * C * 2                        # x block (double-buffered, bf16)
        + 2 * C * Hdr_g * 2                   # W block (double-buffered, bf16)
        + 2 * Hdr_g * 4                       # b block
        + 2 * Hdr_g * max(Hg, lane) * 4       # vbd block (lane-padded)
        + 2 * C * max(Hg, lane) * 4           # output block (lane-padded)
        + C * max(Hg, lane) * 4               # acc scratch
        + Tt * Hdr_g * 4                      # hid temporary (f32)
        + Tt * max(Hg, lane) * 4)             # logits / p temporaries
    vmem_limit = int(min(max(vmem_needed * 1.5, 32 * 2**20), 56 * 2**20))

    out = pl.pallas_call(
        _mhap_kernel,
        out_shape=jax.ShapeDtypeStruct((B, G, C, Hg), jnp.float32),
        grid=(B, G, NT),
        in_specs=[
            pl.BlockSpec((1, Tt, C), lambda bb, g, t: (bb, t, 0)),     # x tile
            pl.BlockSpec((1, C, Hdr_g), lambda bb, g, t: (g, 0, 0)),   # fused W
            pl.BlockSpec((1, 1, Hdr_g), lambda bb, g, t: (g, 0, 0)),   # fused b
            pl.BlockSpec((1, Hdr_g, Hg), lambda bb, g, t: (g, 0, 0)),  # blockdiag v
        ],
        out_specs=pl.BlockSpec((1, 1, C, Hg), lambda bb, g, t: (bb, g, 0, 0)),
        scratch_shapes=[
            pltpu.VMEM((1, Hg), jnp.float32),    # running max
            pltpu.VMEM((1, Hg), jnp.float32),    # running denominator
            pltpu.VMEM((C, Hg), jnp.float32),    # pooled accumulator
        ],
        compiler_params=pltpu.CompilerParams(
            dimension_semantics=("parallel", "parallel", "arbitrary"),
            vmem_limit_bytes=vmem_limit),
        cost_estimate=pl.CostEstimate(
            flops=flops, transcendentals=transcendentals,
            bytes_accessed=bytes_accessed),
    )(xt, W3, b3, Vbd3)

    # (B, G, C, Hg) -> (B, G, Hg, C) -> (B, H*C); heads ordered pool1..pool8,
    # channels contiguous per head, exactly like torch.cat(..., dim=1).
    return jnp.transpose(out, (0, 1, 3, 2)).reshape(B, H * C)


def mhap_ref(x, W, b, v):
    """Pure-JAX f32 reference of the MHAP forward pass."""
    xt = jnp.transpose(x, (0, 2, 1))                     # (B, T, C)
    outs = []
    for h in range(W.shape[0]):
        hid = jnp.tanh(xt @ W[h] + b[h])                 # (B, T, dr)
        logits = jnp.sum(hid * v[h], axis=-1)            # (B, T)
        attn = jax.nn.softmax(logits, axis=1)[..., None]
        outs.append(jnp.sum(xt * attn, axis=1))          # (B, C)
    return jnp.concatenate(outs, axis=1)                 # (B, H*C)


if __name__ == "__main__":
    # Small synthetic shapes consistent with the module's forward
    # (production would be C=2048, dr=512, T~1k; scaled down here).
    B, C, T = 2, 64, 16          # batch, input_dim (channels), time steps
    H, dr = 8, 32                # num_head == 8 (asserted in MHAP), reduced dim

    key = jax.random.PRNGKey(0)
    kx, kw, kb, kv = jax.random.split(key, 4)

    x = jax.random.normal(kx, (B, C, T), dtype=jnp.float32)
    W = 0.05 * jax.random.normal(kw, (H, C, dr), dtype=jnp.float32)
    b = 0.05 * jax.random.normal(kb, (H, 1, dr), dtype=jnp.float32)
    v = 0.05 * jax.random.normal(kv, (H, 1, dr), dtype=jnp.float32)

    # Weight repacking done once (model-load time), not per forward call.
    W3, b3, Vbd3 = prepare_mhap_params(W, b, v)

    out = mhap_forward(x, W3, b3, Vbd3)
    out = jax.block_until_ready(out)

    ref = mhap_ref(x, W, b, v)
    assert out.shape == (B, H * C), out.shape
    # Tolerance sized for bf16 MXU operands (x, W); softmax math itself is
    # exact f32 (no approx reciprocal any more).
    max_err = float(jnp.max(jnp.abs(out - ref)))
    assert jnp.allclose(out, ref, atol=2e-2, rtol=2e-2), max_err

    print("KERNEL_OK")
</pallas_src>

<mosaic_0001>
module attributes {stable_mosaic.version = 11 : i64} {
  func.func @_mhap_kernel(%arg0: i32, %arg1: i32, %arg2: i32, %arg3: memref<1x16x64xbf16, #tpu.memory_space<vmem>>, %arg4: memref<1x64x128xbf16, #tpu.memory_space<vmem>>, %arg5: memref<1x1x128xf32, #tpu.memory_space<vmem>>, %arg6: memref<1x128x4xf32, #tpu.memory_space<vmem>>, %arg7: memref<1x1x64x4xf32, #tpu.memory_space<vmem>>, %arg8: memref<1x4xf32, #tpu.memory_space<vmem>>, %arg9: memref<1x4xf32, #tpu.memory_space<vmem>>, %arg10: memref<64x4xf32, #tpu.memory_space<vmem>>) attributes {dimension_semantics = [#tpu.dimension_semantics<parallel>, #tpu.dimension_semantics<parallel>, #tpu.dimension_semantics<arbitrary>], iteration_bounds = array<i64: 2, 2, 1>, scalar_prefetch = 0 : i64, scratch_operands = 3 : i64, tpu.core_type = #tpu.core_type<tc>, window_params = [{transform_indices = @transform_0, window_bounds = array<i64: 1, 16, 64>}, {transform_indices = @transform_1, window_bounds = array<i64: 1, 64, 128>}, {transform_indices = @transform_2, window_bounds = array<i64: 1, 1, 128>}, {transform_indices = @transform_3, window_bounds = array<i64: 1, 128, 4>}, {transform_indices = @transform_4, window_bounds = array<i64: 1, 1, 64, 4>}]} {
    %c0_i32 = arith.constant 0 : i32
    %0 = arith.cmpi eq, %arg2, %c0_i32 : i32
    %1 = arith.extui %0 : i1 to i32
    %c0_i32_0 = arith.constant 0 : i32
    %2 = arith.cmpi ne, %1, %c0_i32_0 : i32
    scf.if %2 {
      %cst_30 = arith.constant 0xFF800000 : f32
      %42 = vector.broadcast %cst_30 : f32 to vector<1x4xf32>
      %c0_31 = arith.constant 0 : index
      %c0_32 = arith.constant 0 : index
      %43 = vector.load %arg8[%c0_31, %c0_32] : memref<1x4xf32, #tpu.memory_space<vmem>>, vector<1x4xf32>
      tpu.vector_store %arg8[%c0_31, %c0_32], %42 {strides = array<i32>} : memref<1x4xf32, #tpu.memory_space<vmem>>, vector<1x4xf32>,
      %cst_33 = arith.constant 0.000000e+00 : f32
      %44 = vector.broadcast %cst_33 : f32 to vector<1x4xf32>
      %c0_34 = arith.constant 0 : index
      %c0_35 = arith.constant 0 : index
      %45 = vector.load %arg9[%c0_34, %c0_35] : memref<1x4xf32, #tpu.memory_space<vmem>>, vector<1x4xf32>
      tpu.vector_store %arg9[%c0_34, %c0_35], %44 {strides = array<i32>} : memref<1x4xf32, #tpu.memory_space<vmem>>, vector<1x4xf32>,
      %cst_36 = arith.constant 0.000000e+00 : f32
      %46 = vector.broadcast %cst_36 : f32 to vector<64x4xf32>
      %c0_37 = arith.constant 0 : index
      %c0_38 = arith.constant 0 : index
      %47 = vector.load %arg10[%c0_37, %c0_38] : memref<64x4xf32, #tpu.memory_space<vmem>>, vector<64x4xf32>
      tpu.vector_store %arg10[%c0_37, %c0_38], %46 {strides = array<i32>} : memref<64x4xf32, #tpu.memory_space<vmem>>, vector<64x4xf32>,
    } else {
    }
    %c0 = arith.constant 0 : index
    %c0_1 = arith.constant 0 : index
    %c0_2 = arith.constant 0 : index
    %3 = vector.load %arg3[%c0, %c0_1, %c0_2] : memref<1x16x64xbf16, #tpu.memory_space<vmem>>, vector<1x16x64xbf16>
    %4 = vector.shape_cast %3 : vector<1x16x64xbf16> to vector<16x64xbf16>
    %c0_3 = arith.constant 0 : index
    %c0_4 = arith.constant 0 : index
    %c0_5 = arith.constant 0 : index
    %5 = vector.load %arg4[%c0_3, %c0_4, %c0_5] : memref<1x64x128xbf16, #tpu.memory_space<vmem>>, vector<1x64x128xbf16>
    %6 = vector.shape_cast %5 : vector<1x64x128xbf16> to vector<64x128xbf16>
    %cst = arith.constant dense<0.000000e+00> : vector<16x128xf32>
    %7 = tpu.matmul %4, %6, %cst {dimension_numbers = #tpu.dot_dimension_numbers<[1], [0], [0], [1], [0, 0, 1, 1], [], []>} : vector<16x64xbf16>, vector<64x128xbf16>, vector<16x128xf32> -> vector<16x128xf32>
    %c0_6 = arith.constant 0 : index
    %c0_7 = arith.constant 0 : index
    %c0_8 = arith.constant 0 : index
    %8 = vector.load %arg5[%c0_6, %c0_7, %c0_8] : memref<1x1x128xf32, #tpu.memory_space<vmem>>, vector<1x1x128xf32>
    %9 = vector.shape_cast %8 : vector<1x1x128xf32> to vector<1x128xf32>
    %10 = vector.broadcast %9 : vector<1x128xf32> to vector<16x128xf32>
    %11 = arith.addf %7, %10 : vector<16x128xf32>
    %12 = math.tanh %11 : vector<16x128xf32>
    %c0_9 = arith.constant 0 : index
    %c0_10 = arith.constant 0 : index
    %c0_11 = arith.constant 0 : index
    %13 = vector.load %arg6[%c0_9, %c0_10, %c0_11] : memref<1x128x4xf32, #tpu.memory_space<vmem>>, vector<1x128x4xf32>
    %14 = vector.shape_cast %13 : vector<1x128x4xf32> to vector<128x4xf32>
    %cst_12 = arith.constant dense<0.000000e+00> : vector<16x4xf32>
    %15 = tpu.matmul %12, %14, %cst_12 {dimension_numbers = #tpu.dot_dimension_numbers<[1], [0], [0], [1], [0, 0, 1, 1], [], []>} : vector<16x128xf32>, vector<128x4xf32>, vector<16x4xf32> -> vector<16x4xf32>
    %c0_13 = arith.constant 0 : index
    %c0_14 = arith.constant 0 : index
    %16 = vector.load %arg8[%c0_13, %c0_14] : memref<1x4xf32, #tpu.memory_space<vmem>>, vector<1x4xf32>
    %cst_15 = arith.constant dense<0xFF800000> : vector<4xf32>
    %17 = vector.multi_reduction <maximumf>, %15, %cst_15 [0] : vector<16x4xf32> to vector<4xf32>
    %18 = vector.shape_cast %17 : vector<4xf32> to vector<1x4xf32>
    %19 = arith.maximumf %16, %18 : vector<1x4xf32>
    %20 = arith.subf %16, %19 : vector<1x4xf32>
    %21 = math.exp %20 : vector<1x4xf32>
    %22 = vector.broadcast %19 : vector<1x4xf32> to vector<16x4xf32>
    %23 = arith.subf %15, %22 : vector<16x4xf32>
    %24 = math.exp %23 : vector<16x4xf32>
    %c0_16 = arith.constant 0 : index
    %c0_17 = arith.constant 0 : index
    %25 = vector.load %arg9[%c0_16, %c0_17] : memref<1x4xf32, #tpu.memory_space<vmem>>, vector<1x4xf32>
    %26 = arith.mulf %21, %25 : vector<1x4xf32>
    %cst_18 = arith.constant dense<0.000000e+00> : vector<4xf32>
    %27 = vector.multi_reduction <add>, %24, %cst_18 [0] : vector<16x4xf32> to vector<4xf32>
    %28 = vector.shape_cast %27 : vector<4xf32> to vector<1x4xf32>
    %29 = arith.addf %26, %28 : vector<1x4xf32>
    %c0_19 = arith.constant 0 : index
    %c0_20 = arith.constant 0 : index
    %30 = vector.load %arg9[%c0_19, %c0_20] : memref<1x4xf32, #tpu.memory_space<vmem>>, vector<1x4xf32>
    tpu.vector_store %arg9[%c0_19, %c0_20], %29 {strides = array<i32>} : memref<1x4xf32, #tpu.memory_space<vmem>>, vector<1x4xf32>,
    %c0_21 = arith.constant 0 : index
    %c0_22 = arith.constant 0 : index
    %31 = vector.load %arg10[%c0_21, %c0_22] : memref<64x4xf32, #tpu.memory_space<vmem>>, vector<64x4xf32>
    %32 = vector.broadcast %21 : vector<1x4xf32> to vector<64x4xf32>
    %33 = arith.mulf %32, %31 : vector<64x4xf32>
    %34 = arith.truncf %24 : vector<16x4xf32> to vector<16x4xbf16>
    %cst_23 = arith.constant dense<0.000000e+00> : vector<64x4xf32>
    %35 = tpu.matmul %4, %34, %cst_23 {dimension_numbers = #tpu.dot_dimension_numbers<[0], [0], [1], [1], [0, 1, 1, 1], [], []>} : vector<16x64xbf16>, vector<16x4xbf16>, vector<64x4xf32> -> vector<64x4xf32>
    %36 = arith.addf %33, %35 : vector<64x4xf32>
    %c0_24 = arith.constant 0 : index
    %c0_25 = arith.constant 0 : index
    %37 = vector.load %arg10[%c0_24, %c0_25] : memref<64x4xf32, #tpu.memory_space<vmem>>, vector<64x4xf32>
    tpu.vector_store %arg10[%c0_24, %c0_25], %36 {strides = array<i32>} : memref<64x4xf32, #tpu.memory_space<vmem>>, vector<64x4xf32>,
    %c0_26 = arith.constant 0 : index
    %c0_27 = arith.constant 0 : index
    %38 = vector.load %arg8[%c0_26, %c0_27] : memref<1x4xf32, #tpu.memory_space<vmem>>, vector<1x4xf32>
    tpu.vector_store %arg8[%c0_26, %c0_27], %19 {strides = array<i32>} : memref<1x4xf32, #tpu.memory_space<vmem>>, vector<1x4xf32>,
    %c0_i32_28 = arith.constant 0 : i32
    %39 = arith.cmpi eq, %arg2, %c0_i32_28 : i32
    %40 = arith.extui %39 : i1 to i32
    %c0_i32_29 = arith.constant 0 : i32
    %41 = arith.cmpi ne, %40, %c0_i32_29 : i32
    scf.if %41 {
      %c0_30 = arith.constant 0 : index
      %c0_31 = arith.constant 0 : index
      %42 = vector.load %arg10[%c0_30, %c0_31] : memref<64x4xf32, #tpu.memory_space<vmem>>, vector<64x4xf32>
      %c0_32 = arith.constant 0 : index
      %c0_33 = arith.constant 0 : index
      %43 = vector.load %arg9[%c0_32, %c0_33] : memref<1x4xf32, #tpu.memory_space<vmem>>, vector<1x4xf32>
      %44 = vector.broadcast %43 : vector<1x4xf32> to vector<64x4xf32>
      %45 = arith.divf %42, %44 : vector<64x4xf32>
      %c0_34 = arith.constant 0 : index
      %c0_35 = arith.constant 0 : index
      %c0_36 = arith.constant 0 : index
      %c0_37 = arith.constant 0 : index
      %46 = vector.load %arg7[%c0_34, %c0_35, %c0_36, %c0_37] : memref<1x1x64x4xf32, #tpu.memory_space<vmem>>, vector<1x1x64x4xf32>
      %47 = vector.shape_cast %46 : vector<1x1x64x4xf32> to vector<64x4xf32>
      %48 = vector.shape_cast %45 : vector<64x4xf32> to vector<1x1x64x4xf32>
      tpu.vector_store %arg7[%c0_34, %c0_35, %c0_36, %c0_37], %48 {strides = array<i32>} : memref<1x1x64x4xf32, #tpu.memory_space<vmem>>, vector<1x1x64x4xf32>,
    } else {
    }
    return
  }
  func.func @transform_0(%arg0: i32, %arg1: i32, %arg2: i32) -> (i32, i32, i32) {
    %c0_i32 = arith.constant 0 : i32
    %c0_i32_0 = arith.constant 0 : i32
    return %arg0, %arg2, %c0_i32 : i32, i32, i32
  }
  func.func @transform_1(%arg0: i32, %arg1: i32, %arg2: i32) -> (i32, i32, i32) {
    %c0_i32 = arith.constant 0 : i32
    %c0_i32_0 = arith.constant 0 : i32
    %c0_i32_1 = arith.constant 0 : i32
    return %arg1, %c0_i32, %c0_i32_0 : i32, i32, i32
  }
  func.func @transform_2(%arg0: i32, %arg1: i32, %arg2: i32) -> (i32, i32, i32) {
    %c0_i32 = arith.constant 0 : i32
    %c0_i32_0 = arith.constant 0 : i32
    %c0_i32_1 = arith.constant 0 : i32
    return %arg1, %c0_i32, %c0_i32_0 : i32, i32, i32
  }
  func.func @transform_3(%arg0: i32, %arg1: i32, %arg2: i32) -> (i32, i32, i32) {
    %c0_i32 = arith.constant 0 : i32
    %c0_i32_0 = arith.constant 0 : i32
    %c0_i32_1 = arith.constant 0 : i32
    return %arg1, %c0_i32, %c0_i32_0 : i32, i32, i32
  }
  func.func @transform_4(%arg0: i32, %arg1: i32, %arg2: i32) -> (i32, i32, i32, i32) {
    %c0_i32 = arith.constant 0 : i32
    %c0_i32_0 = arith.constant 0 : i32
    %c0_i32_1 = arith.constant 0 : i32
    return %arg0, %arg1, %c0_i32, %c0_i32_0 : i32, i32, i32, i32
  }
}

</mosaic_0001>

<bundles_post_ra>
// kernel: mhap_forward.1
= control target key start
LH: loop header
LB: loop body
LE: loop exit
PB: predicated region body
PF: predicated region fallthrough
CT: control target
= control target key end

     0   :  { %s897_s15 = smov 0   ;;  %s899_s16 = smov 0   ;;  %s1045_s0 = inlined_call_operand.vmem [shape: bf16[2,16,64], index: 0, kind: input, shape index: {}]   ;;  %s1046_s1 = inlined_call_operand.vmem [shape: bf16[2,64,128], index: 1, kind: input, shape index: {}]   ;;  %s1047_s2 = inlined_call_operand.vmem [shape: f32[2,1,128], index: 2, kind: input, shape index: {}]   ;;  %s1048_s3 = inlined_call_operand.vmem [shape: f32[2,128,4], index: 3, kind: input, shape index: {}]   ;;  %s1049_s4 = inlined_call_operand.vmem [shape: f32[2,2,64,4], index: 4, kind: output, shape index: {}]  }
   0x1   :  { %s901_s17 = smov 0   ;;  %s903_s18 = smov 0  }
   0x2   :  { %s905_s19 = smov 0  }
   0x3 LB: > { %s29_s20 = sadd.s32 1, %s860_s17  ;;  %s33_s21 = sadd.s32 1, %s864_s18  ;;  %s868_s19 = sphi %s905_s19, %s14_s19   ;;  %s864_s18 = sphi %s903_s18, %s1053_s18   ;;  %s860_s17 = sphi %s901_s17, %s1052_s17   ;;  %s856_s16 = sphi %s899_s16, %s1051_s16   ;;  %s852_s15 = sphi %s897_s15, %s1050_s15  }
   0x4   : > { %p31_p0 = scmp.ge.s32.totalorder %s29_s20, 2  ;;  %p727_p1 = scmp.ge.s32.totalorder %s868_s19, 1 }
   0x5   : > { %p218_p2 = scmp.lt.s32.totalorder %s868_s19, 5 }
   0x6   : > { %s1055_s20 = smov (%p31_p0, %s29_s20), 0  ;;  %s1057_s21 = smov (!%p31_p0, %s33_s21), %s864_s18 }
   0x7   : > { %p219_p3 = pnand %p727_p1, %p218_p2  ;;  %p35_p4 = scmp.ge.s32.totalorder %s1057_s21, 2 }
   0x8   : > { %p275_p5 = scmp.lt.s32.totalorder (!%p219_p3), %s852_s15, 1  ;;  %p266_p6 = scmp.lt.s32.totalorder (!%p219_p3), %s856_s16, 1 }
   0x9   : > { %s1059_s21 = smov (%p35_p4, %s1057_s21), 0  ;;  %222 = sbr.rel (%p219_p3) target bundleno = 523 (0x20b), region = 36 }
   0xe   : > { %s1061_s15 = smov (!%p275_p5, %s852_s15), 1  ;;  %s1063_s16 = smov (!%p266_p6, %s856_s16), 1  ;;  %vm357_vm0 = vcmask 523264   ;;  %vm302_vm1 = vcmask 24576   ;;  %v870_v28 = vmov -inf   ;;  %vm305_vm2 = vcmask 31744  }
   0xf   : > { %s765_s22 = sshll.u32 %s1061_s15, 5  ;;  %s766_s23 = sshll.u32 %s1061_s15, 7  ;;  %303 = vst.msk [vmem:[#allocation2] sm:$0x1] %vm302_vm1, %v870_v28  ;;  %v871_v29 = vmov 0.0   ;;  %vm491_vm3 = vcmask 130048  }
  0x10   : > { %s279_s26 = scalar_lea.vmem %s1046_s1, %s765_s22  ;;  %s937_s29 = scalar_lea.vmem %s1048_s3, %s766_s23  ;;  %304 = vst.msk [vmem:[#allocation3] sm:$0x1] %vm302_vm1, %v871_v29 }
  0x11   : > { %v771_v0 = vld [vmem:[%s279_s26 + $0x18] sm:$0xff]  ;;  %s764_s30 = sshll.u32 %s1063_s16, 3  ;;  %s734_s5 = sshll.u32 %s1061_s15, 3  ;;  %v391_v2 = vld [vmem:[%s937_s29 + $0x70] sm:$0xff]  ;;  %v390_v5 = vld [vmem:[%s937_s29 + $0x68] sm:$0xff]  ;;  %306 = vst.msk [vmem:[#allocation4] sm:$0xff] %vm305_vm2, %v871_v29 }
  0x12   : > { %s273_s8 = scalar_lea.vmem %s1045_s0, %s764_s30  ;;  %s735_s9 = sshll.u32 %s1063_s16, 4  ;;  %v392_v1 = vld [vmem:[%s937_s29 + $0x78] sm:$0xff]  ;;  %365 = vmatpush.bf16.msra.mxu0 %v771_v0  ;;  %v770_v3 = vld [vmem:[%s279_s26 + $0x10] sm:$0xff]  ;;  %v389_v6 = vld [vmem:[%s937_s29 + $0x60] sm:$0xff]  ;;  %307 = vst.msk [vmem:[#allocation4 + $0x8] sm:$0xff] %vm305_vm2, %v871_v29 }
  0x13   : > { %s945_s10 = sadd.s32 %s735_s9, %s734_s5  ;;  %v767_v4 = vld [vmem:[%s273_s8] sm:$0xff]  ;;  %393 = vmatpush.msra.mxu1 %v392_v1  ;;  %s282_s13 = scalar_lea.vmem %s1047_s2, %s1061_s15  ;;  %v769_v7 = vld [vmem:[%s279_s26 + $0x8] sm:$0xff]  ;;  %v388_v8 = vld [vmem:[%s937_s29 + $0x58] sm:$0xff]  ;;  %308 = vst.msk [vmem:[#allocation4 + $0x10] sm:$0xff] %vm305_vm2, %v871_v29 }
  0x14   : > { %475 = vxpose.xlu0.c.b16.start.end [1/1] (short) (narrow) %v767_v4, 64  ;;  %v387_v9 = vld [vmem:[%s937_s29 + $0x50] sm:$0xff]  ;;  %v768_v10 = vld [vmem:[%s279_s26] sm:$0xff]  ;;  %v386_v11 = vld [vmem:[%s937_s29 + $0x48] sm:$0xff]  ;;  %309 = vst.msk [vmem:[#allocation4 + $0x18] sm:$0xff] %vm305_vm2, %v871_v29  ;;  %s736_s15 = sshll.u32 %s945_s10, 3 }
  0x15   : > { %394 = vmatpush.msra.mxu1 %v391_v2  ;;  %v385_v12 = vld [vmem:[%s937_s29 + $0x40] sm:$0xff]  ;;  %v384_v13 = vld [vmem:[%s937_s29 + $0x38] sm:$0xff]  ;;  %v383_v14 = vld [vmem:[%s937_s29 + $0x30] sm:$0xff]  ;;  %310 = vst.msk [vmem:[#allocation4 + $0x20] sm:$0xff] %vm305_vm2, %v871_v29  ;;  %s1002_s24 = scalar_lea.vmem %s1049_s4, %s736_s15 }
  0x16   : > { %366 = vmatpush.bf16.msra.mxu0 %v770_v3  ;;  %v382_v15 = vld [vmem:[%s937_s29 + $0x28] sm:$0xff]  ;;  %v381_v16 = vld [vmem:[%s937_s29 + $0x20] sm:$0xff]  ;;  %v380_v17 = vld [vmem:[%s937_s29 + $0x18] sm:$0xff]  ;;  %311 = vst.msk [vmem:[#allocation4 + $0x28] sm:$0xff] %vm305_vm2, %v871_v29 }
  0x17   : > { %395 = vmatpush.msra.mxu1 %v390_v5  ;;  %v379_v18 = vld [vmem:[%s937_s29 + $0x10] sm:$0xff]  ;;  %v378_v19 = vld [vmem:[%s937_s29 + $0x8] sm:$0xff]  ;;  %v377_v20 = vld [vmem:[%s937_s29] sm:$0xff]  ;;  %312 = vst.msk [vmem:[#allocation4 + $0x30] sm:$0xff] %vm305_vm2, %v871_v29 }
  0x18   : > { %v816_v21 = vld [vmem:[%s282_s13] ss:$0 sm:$0xff]  ;;  %313 = vst.msk [vmem:[#allocation4 + $0x38] sm:$0xff] %vm305_vm2, %v871_v29  ;;  %v440_v63 = vld [vmem:[#allocation3] sm:$0x1] }
  0x19   : > { %396 = vmatpush.msra.mxu1 %v389_v6  ;;  %v416_v40 = vld [vmem:[#allocation2] sm:$0x1] }
  0x1a   : > { %367 = vmatpush.bf16.msra.mxu0 %v769_v7 }
  0x1b   : > { %397 = vmatpush.msra.mxu1 %v388_v8 }
  0x1d   : > { %398 = vmatpush.msra.mxu1 %v387_v9 }
  0x1e   : > { %368 = vmatpush.bf16.msra.mxu0 %v768_v10 }
  0x1f   : > { %399 = vmatpush.msra.mxu1 %v386_v11  ;;  %v454_v11 = vld [vmem:[#allocation4] sm:$0xff] }
  0x21   : > { %400 = vmatpush.msra.mxu1 %v385_v12  ;;  %757 = vmatmul.msk.bf16.vlgmr.msra.gmra.mxu0 %vm357_vm0, %v767_v4  ;;  %v456_v12 = vld [vmem:[#allocation4 + $0x10] sm:$0xff] }
  0x23   : > { %401 = vmatpush.msra.mxu1 %v384_v13 }
  0x25   : > { %402 = vmatpush.msra.mxu1 %v383_v14 }
  0x27   : > { %403 = vmatpush.msra.mxu1 %v382_v15 }
  0x29   : > { %404 = vmatpush.msra.mxu1 %v381_v16 }
  0x2b   : > { %405 = vmatpush.msra.mxu1 %v380_v17 }
  0x2d   : > { %406 = vmatpush.msra.mxu1 %v379_v18 }
  0x2f   : > { %407 = vmatpush.msra.mxu1 %v378_v19 }
  0x31   : > { %408 = vmatpush.msra.mxu1 %v377_v20 }
  0x9e   : > { %v370_v22 = vpop.f32.mrf.mxu0 }
  0x9f   : > { %v371_v23 = vadd.f32 %v816_v21, %v370_v22  ;;  %v455_v22 = vld [vmem:[#allocation4 + $0x8] sm:$0xff] }
  0xa1   : > { %818 = vtanh.f32 %v371_v23  ;;  %v457_v23 = vld [vmem:[#allocation4 + $0x18] sm:$0xff] }
  0xa6   : > { %v372_v24 = vpop.f32.mrf.mxu0 }
  0xa7   : > { %v819_v25 = vpop.eup %818  ;;  %v373_v26 = vadd.f32 %v816_v21, %v372_v24 }
  0xa8   : > { %409 = vmatmul.f32.vlgmr.msra.gmra.mxu1 %v819_v25 }
  0xa9   : > { %820 = vtanh.f32 %v373_v26 }
  0xaf   : > { %v821_v27 = vpop.eup %820 }
  0xb0   : > { %412 = vmatmul.f32.gmra.mxu1 %v821_v27 }
  0xc0   : > { %v483_v48 = vpop.trf.xlu0 }
  0xd0   : > { %v484_v57 = vpop.trf.xlu0 }
  0xe0   : > { %v485_v4 = vpop.trf.xlu0 }
  0xf0   : > { %v486_v5 = vpop.trf.xlu0 }
 0x125   : > { %v410_v30 = vpop.f32.mrf.mxu1 }
 0x126   : > { %v418_v32 = vsel %vm305_vm2, %v410_v30, -inf }
 0x12d   : > { %v413_v31 = vpop.f32.mrf.mxu1 }
 0x12e   : > { %v419_v33 = vsel %vm305_vm2, %v413_v31, -inf }
 0x12f   : > { %v420_v34 = vmax.f32 %v418_v32, %v419_v33 }
 0x131   : > { %v421_v35 = vrot.slane %v420_v34, 4 }
 0x133   : > { %v422_v36 = vmax.f32 %v420_v34, %v421_v35 }
 0x135   : > { %v423_v37 = vrot.slane %v422_v36, 2 }
 0x137   : > { %v424_v38 = vmax.f32 %v422_v36, %v423_v37 }
 0x139   : > { %v425_v39 = vrot.slane %v424_v38, 1 }
 0x13b   : > { %v426_v41 = vmax.f32 %v424_v38, %v425_v39  ;;  %v458_v38 = vld [vmem:[#allocation4 + $0x20] sm:$0xff] }
 0x13d   : > { %v427_v42 = vmax.f32 %v416_v40, %v426_v41 }
 0x13f   : > { %v432_v43 = vperm.slane %v427_v42, 0  ;;  %549 = vst.msk [vmem:[#allocation2] sm:$0x1] %vm302_vm1, %v427_v42  ;;  %v428_v49 = vsub.f32 %v416_v40, %v427_v42 }
 0x141   : > { %v434_v44 = vsub.f32 %v410_v30, %v432_v43  ;;  %v435_v45 = vsub.f32 %v413_v31, %v432_v43  ;;  %v429_v53 = vmul.f32 1.442695, %v428_v49 }
 0x143   : > { %v436_v46 = vmul.f32 1.442695, %v434_v44  ;;  %v438_v47 = vmul.f32 1.442695, %v435_v45 }
 0x145   : > { %822 = vpow2.f32 %v436_v46  ;;  %v459_v46 = vld [vmem:[#allocation4 + $0x28] sm:$0xff] }
 0x146   : > { %824 = vpow2.f32 %v438_v47 }
 0x147   : > { %826 = vpow2.f32 %v429_v53 }
 0x14b   : > { %v823_v50 = vpop.eup %822 }
 0x14c   : > { %v825_v51 = vpop.eup %824  ;;  %v442_v52 = vsel %vm305_vm2, %v823_v50, 0.0 }
 0x14d   : > { %v443_v54 = vsel %vm305_vm2, %v825_v51, 0.0  ;;  %v473_v55 = vpack.c.bf16 %v825_v51, %v823_v50  ;;  %v827_v62 = vpop.eup %826 }
 0x14e   : > { %v444_v56 = vadd.f32 %v443_v54, %v442_v52  ;;  %v441_v1 = vmul.f32 %v827_v62, %v440_v63  ;;  %v990_v9 = vperm.slane %v827_v62, 0  ;;  %v460_v52 = vld [vmem:[#allocation4 + $0x30] sm:$0xff] }
 0x14f   : > { %511 = vmatpush.bf16.msra.mxu2 %v473_v55  ;;  %772 = vmatpush.bf16.msra.mxu3 %v473_v55 }
 0x150   : > { %v445_v58 = vrot.slane %v444_v56, 4  ;;  %v465_v13 = vmul.f32 %v990_v9, %v454_v11  ;;  %v467_v15 = vmul.f32 %v990_v9, %v456_v12  ;;  %v466_v26 = vmul.f32 %v990_v9, %v455_v22 }
 0x151   : > { %v468_v27 = vmul.f32 %v990_v9, %v457_v23  ;;  %v469_v39 = vmul.f32 %v990_v9, %v458_v38  ;;  %v470_v47 = vmul.f32 %v990_v9, %v459_v46  ;;  %v471_v53 = vmul.f32 %v990_v9, %v460_v52 }
 0x152   : > { %v446_v59 = vadd.f32 %v445_v58, %v444_v56  ;;  %758 = vmatmul.msk.bf16.vlgmr.msra.gmra.mxu2 %vm491_vm3, %v483_v48  ;;  %759 = vmatmul.msk.bf16.vlgmr.msra.gmra.mxu3 %vm491_vm3, %v484_v57  ;;  %v461_v58 = vld [vmem:[#allocation4 + $0x38] sm:$0xff] }
 0x154   : > { %v447_v60 = vrot.slane %v446_v59, 2 }
 0x156   : > { %v448_v61 = vadd.f32 %v447_v60, %v446_v59  ;;  %v472_v59 = vmul.f32 %v990_v9, %v461_v58 }
 0x158   : > { %v449_v0 = vrot.slane %v448_v61, 1 }
 0x15a   : > { %v450_v2 = vadd.f32 %v449_v0, %v448_v61 }
 0x15c   : > { %v451_v3 = vadd.f32 %v450_v2, %v441_v1 }
 0x15e   : > { %453 = vst.msk [vmem:[#allocation3] sm:$0x1] %vm302_vm1, %v451_v3 }
 0x162   : > { %760 = vmatmul.msk.bf16.gmra.mxu3 %vm491_vm3, %v485_v4 }
 0x165   : > { %v817_v6 = vld [vmem:[#allocation3] ss:$0 sm:$0xff] }
 0x166   : > { %828 = vrcp.f32 %v817_v6  ;;  %v576_v21 = vand.u32 2147483648, %v817_v6  ;;  %vm570_vm5 = vweird.f32 %v817_v6  ;;  %v574_v24 = vand.u32 2147483647, %v817_v6 }
 0x168   : > { %v577_v28 = vor.u32 1.1754944e-38, %v576_v21  ;;  %vm575_vm7 = vcmp.eq.f32.partialorder %v574_v24, 8.507059e+37 }
 0x16c   : > { %v829_v7 = vpop.eup %828 }
 0x16d   : > { %v566_v8 = vmul.f32 %v829_v7, %v817_v6  ;;  %vm571_vm4 = vweird.f32 %v829_v7 }
 0x16e   : > { %vm572_vm6 = vmor %vm570_vm5, %vm571_vm4 }
 0x16f   : > { %v567_v10 = vsub.f32 1.0, %v566_v8 }
 0x171   : > { %v568_v14 = vmul.f32 %v829_v7, %v567_v10 }
 0x172   : > { %761 = vmatmul.msk.bf16.gmra.mxu3 %vm491_vm3, %v486_v5 }
 0x173   : > { %v569_v20 = vadd.f32 %v829_v7, %v568_v14 }
 0x175   : > { %v573_v25 = vsel %vm572_vm6, %v829_v7, %v569_v20 }
 0x176   : > { %v578_v34 = vsel %vm575_vm7, %v577_v28, %v573_v25 }
 0x1d5   : > { %v513_v16 = vpop.f32.mrf.mxu2  ;;  %v518_v17 = vpop.f32.mrf.mxu3 }
 0x1d6   : > { %v533_v18 = vadd.f32 %v513_v16, %v465_v13  ;;  %v535_v19 = vadd.f32 %v518_v17, %v467_v15 }
 0x1d8   : > { %541 = vst.msk [vmem:[#allocation4] sm:$0xff] %vm305_vm2, %v533_v18 }
 0x1d9   : > { %543 = vst.msk [vmem:[#allocation4 + $0x10] sm:$0xff] %vm305_vm2, %v535_v19 }
 0x1dd   : > { %v515_v29 = vpop.f32.mrf.mxu2  ;;  %v520_v30 = vpop.f32.mrf.mxu3 }
 0x1de   : > { %v534_v31 = vadd.f32 %v515_v29, %v466_v26  ;;  %v536_v32 = vadd.f32 %v520_v30, %v468_v27 }
 0x1df   : > { %v553_v33 = vld [vmem:[#allocation4] sm:$0xff] }
 0x1e0   : > { %v579_v35 = vmul.f32 %v578_v34, %v553_v33  ;;  %v555_v36 = vld [vmem:[#allocation4 + $0x10] sm:$0xff]  ;;  %542 = vst.msk [vmem:[#allocation4 + $0x8] sm:$0xff] %vm305_vm2, %v534_v31 }
 0x1e1   : > { %v581_v37 = vmul.f32 %v578_v34, %v555_v36  ;;  %544 = vst.msk [vmem:[#allocation4 + $0x18] sm:$0xff] %vm305_vm2, %v536_v32 }
 0x1e2   : > { %587 = vst.msk [vmem:[%s1002_s24] sm:$0xff] %vm305_vm2, %v579_v35 }
 0x1e3   : > { %589 = vst.msk [vmem:[%s1002_s24 + $0x10] sm:$0xff] %vm305_vm2, %v581_v37 }
 0x1e5   : > { %v523_v40 = vpop.f32.mrf.mxu3 }
 0x1e6   : > { %v537_v41 = vadd.f32 %v523_v40, %v469_v39 }
 0x1e7   : > { %v554_v42 = vld [vmem:[#allocation4 + $0x8] sm:$0xff] }
 0x1e8   : > { %v580_v43 = vmul.f32 %v578_v34, %v554_v42  ;;  %v556_v44 = vld [vmem:[#allocation4 + $0x18] sm:$0xff]  ;;  %545 = vst.msk [vmem:[#allocation4 + $0x20] sm:$0xff] %vm305_vm2, %v537_v41 }
 0x1e9   : > { %v582_v45 = vmul.f32 %v578_v34, %v556_v44 }
 0x1ea   : > { %588 = vst.msk [vmem:[%s1002_s24 + $0x8] sm:$0xff] %vm305_vm2, %v580_v43 }
 0x1eb   : > { %590 = vst.msk [vmem:[%s1002_s24 + $0x18] sm:$0xff] %vm305_vm2, %v582_v45 }
 0x1ed   : > { %v525_v48 = vpop.f32.mrf.mxu3 }
 0x1ee   : > { %v538_v49 = vadd.f32 %v525_v48, %v470_v47 }
 0x1ef   : > { %v557_v50 = vld [vmem:[#allocation4 + $0x20] sm:$0xff] }
 0x1f0   : > { %v583_v51 = vmul.f32 %v578_v34, %v557_v50  ;;  %546 = vst.msk [vmem:[#allocation4 + $0x28] sm:$0xff] %vm305_vm2, %v538_v49 }
 0x1f2   : > { %591 = vst.msk [vmem:[%s1002_s24 + $0x20] sm:$0xff] %vm305_vm2, %v583_v51 }
 0x1f5   : > { %v528_v54 = vpop.f32.mrf.mxu3 }
 0x1f6   : > { %v539_v55 = vadd.f32 %v528_v54, %v471_v53 }
 0x1f7   : > { %v558_v56 = vld [vmem:[#allocation4 + $0x28] sm:$0xff] }
 0x1f8   : > { %v584_v57 = vmul.f32 %v578_v34, %v558_v56  ;;  %547 = vst.msk [vmem:[#allocation4 + $0x30] sm:$0xff] %vm305_vm2, %v539_v55 }
 0x1fa   : > { %592 = vst.msk [vmem:[%s1002_s24 + $0x28] sm:$0xff] %vm305_vm2, %v584_v57 }
 0x1fd   : > { %v530_v60 = vpop.f32.mrf.mxu3 }
 0x1fe   : > { %v540_v61 = vadd.f32 %v530_v60, %v472_v59 }
 0x1ff   : > { %v559_v62 = vld [vmem:[#allocation4 + $0x30] sm:$0xff] }
 0x200   : > { %v585_v63 = vmul.f32 %v578_v34, %v559_v62  ;;  %548 = vst.msk [vmem:[#allocation4 + $0x38] sm:$0xff] %vm305_vm2, %v540_v61 }
 0x202   : > { %593 = vst.msk [vmem:[%s1002_s24 + $0x30] sm:$0xff] %vm305_vm2, %v585_v63 }
 0x207   : > { %v560_v0 = vld [vmem:[#allocation4 + $0x38] sm:$0xff] }
 0x208   : > { %v586_v1 = vmul.f32 %v578_v34, %v560_v0 }
 0x20a   : > { %594 = vst.msk [vmem:[%s1002_s24 + $0x38] sm:$0xff] %vm305_vm2, %v586_v1 }
 0x20b PF: > { %s14_s19 = sadd.s32 1, %s868_s19   ;;  %s1050_s15 = smov %s860_s17 }
 0x20c   : > { %p11_p7 = scmp.ge.s32.totalorder %s14_s19, 6   ;;  %s1051_s16 = smov %s864_s18 }
 0x20d   : > { %s1052_s17 = smov %s1055_s20  ;;  %s1053_s18 = smov %s1059_s21 }
 0x20e   :  { %13 = sbr.rel (!%p11_p7) target bundleno = 3 (0x3), region = 83 }

</bundles_post_ra>
